<compile_context>
chip_gen: v6e
topology: v6e:2x2x1
jax: 0.10.0
libtpu: 0.0.40
codegen_flags: <defaults>
</compile_context>

<pallas_src>
import math

import jax
import jax.numpy as jnp
from jax import lax
from jax.experimental import pallas as pl
from jax.experimental.pallas import tpu as pltpu

LANE = 128
SUBLANE = 8
SLAB_ROWS = 64                   # rows per inner fori_loop step (8 f32 vregs / input)
DEFAULT_MAX_TILE_ROWS = 8192     # 8192 x 128 f32 = 4 MiB per input per pipeline buffer


def _make_sse_kernel(tile_rows: int, rows_valid: int, needs_mask: bool):
    """Kernel emitting one f32 partial sum-of-squared-differences per grid step."""
    n_slabs = tile_rows // SLAB_ROWS
    rem_rows = tile_rows - n_slabs * SLAB_ROWS

    def block_sse(pred_ref, tgt_ref, row0, masked):
        def slab_sq(r_start, r_size):
            p = pred_ref[pl.ds(r_start, r_size), :].astype(jnp.float32)
            t = tgt_ref[pl.ds(r_start, r_size), :].astype(jnp.float32)
            d = p - t
            sq = d * d
            if masked:
                # Cheap sublane-only iota; broadcast along lanes inside the select.
                ridx = row0 + r_start + lax.broadcasted_iota(jnp.int32, (r_size, 1), 0)
                sq = jnp.where(ridx < rows_valid, sq, 0.0)
            return sq

        total = jnp.float32(0.0)
        if n_slabs > 0:
            def body(k, acc):
                r = pl.multiple_of(k * SLAB_ROWS, SLAB_ROWS)
                return acc + slab_sq(r, SLAB_ROWS)

            bulk = lax.fori_loop(0, n_slabs, body,
                                 jnp.zeros((SLAB_ROWS, LANE), jnp.float32),
                                 unroll=2 if n_slabs > 1 else 1)
            total = total + jnp.sum(bulk)          # one cross-lane reduce per block
        if rem_rows > 0:
            total = total + jnp.sum(slab_sq(n_slabs * SLAB_ROWS, rem_rows))
        return total

    def kernel(pred_ref, tgt_ref, out_ref):
        row0 = pl.program_id(0) * tile_rows

        if needs_mask:
            # Only the ragged trailing block pays for iota + compare + select; the
            # steady-state path is pure sub / mul / accumulate.
            @pl.when(row0 + tile_rows <= rows_valid)
            def _():
                out_ref[0, 0] = block_sse(pred_ref, tgt_ref, row0, False)

            @pl.when(row0 + tile_rows > rows_valid)
            def _():
                out_ref[0, 0] = block_sse(pred_ref, tgt_ref, row0, True)
        else:
            out_ref[0, 0] = block_sse(pred_ref, tgt_ref, row0, False)

    return kernel


def weighted_mse_loss(prediction, target, weight: float,
                      *, max_tile_rows: int = DEFAULT_MAX_TILE_ROWS):
    """weight * mean((prediction - target)**2) via a Pallas partial-sum kernel."""
    assert prediction.shape == target.shape
    n_elems = prediction.size
    if n_elems == 0:
        return jnp.float32(0.0)

    scale = jnp.float32(weight / float(n_elems))

    pred_flat = prediction.reshape(-1)
    tgt_flat = target.reshape(-1)

    # Kernel covers the 128-aligned prefix; the (<128 element) ragged tail is a
    # trivial jnp reduction.  No jnp.pad (which would copy both full arrays).
    main = (n_elems // LANE) * LANE
    sse_tail = None
    if main < n_elems:
        d_tail = (pred_flat[main:].astype(jnp.float32)
                  - tgt_flat[main:].astype(jnp.float32))
        sse_tail = jnp.sum(d_tail * d_tail)
    if main == 0:
        return scale * sse_tail

    rows = main // LANE
    pred2d = pred_flat[:main].reshape(rows, LANE)   # native dtype; cast happens in-kernel
    tgt2d = tgt_flat[:main].reshape(rows, LANE)

    if rows <= max_tile_rows:
        tile_rows = rows                            # single full-extent block (always legal)
    else:
        # multiple of 16 so bf16 (16,128) packing stays clean
        tile_rows = max(2 * SUBLANE, max_tile_rows - max_tile_rows % (2 * SUBLANE))
    steps = pl.cdiv(rows, tile_rows)
    needs_mask = (steps * tile_rows) != rows        # only the ragged trailing block masks

    kernel = _make_sse_kernel(tile_rows, rows, needs_mask)

    itemsize = jnp.dtype(prediction.dtype).itemsize
    # 2 inputs x 2 pipeline buffers x block, plus slack for internal scratch.
    vmem_limit = int(min(max(4 * tile_rows * LANE * itemsize + (4 << 20), 16 << 20),
                         48 << 20))

    partials = pl.pallas_call(
        kernel,
        out_shape=jax.ShapeDtypeStruct((steps, 1), jnp.float32),
        grid_spec=pltpu.PrefetchScalarGridSpec(
            num_scalar_prefetch=0,
            grid=(steps,),
            in_specs=[
                pl.BlockSpec((tile_rows, LANE), lambda s: (s, 0)),
                pl.BlockSpec((tile_rows, LANE), lambda s: (s, 0)),
            ],
            out_specs=pl.BlockSpec((1, 1), lambda s: (s, 0),
                                   memory_space=pltpu.SMEM),
        ),
        compiler_params=pltpu.CompilerParams(
            dimension_semantics=("parallel",),      # megacore splits blocks across TCs
            vmem_limit_bytes=vmem_limit,
        ),
        cost_estimate=pl.CostEstimate(
            flops=3 * main,
            transcendentals=0,
            bytes_accessed=2 * main * itemsize + 4 * steps,
        ),
    )(pred2d, tgt2d)

    sse = jnp.sum(partials)
    if sse_tail is not None:
        sse = sse + sse_tail
    return scale * sse


class PallasLoss:
    """JAX/Pallas port of the reference `Loss` module."""

    def __init__(self, dice_weight: float, ce_weight: float, mse_weight: float):
        norm = math.sqrt(dice_weight ** 2 + ce_weight ** 2 + mse_weight ** 2)
        self.dice_weight = dice_weight / norm
        self.ce_weight = ce_weight / norm
        self.mse_weight = mse_weight / norm

    def __call__(self, prediction, target):
        # forward = dice_weight * MSE(prediction, target)  (+ untranslatable CE-module term)
        return weighted_mse_loss(prediction, target, self.dice_weight)


if __name__ == "__main__":
    key = jax.random.PRNGKey(0)
    loss_fn = PallasLoss(dice_weight=1.0, ce_weight=1.0, mse_weight=1.0)

    def ref_loss(p, t):
        d = p.astype(jnp.float32) - t.astype(jnp.float32)
        return jnp.float32(loss_fn.dice_weight) * jnp.mean(d * d)

    # (shape, dtype, max_tile_rows override) — small shapes; overrides exercise the
    # multi-block / ragged-trailing-block / parallel-grid paths at tiny sizes.
    cases = [
        ((2, 4, 16, 16), jnp.float32, None),     # single block, default tiling
        ((2, 8, 40, 128), jnp.float32, 512),     # 2 blocks, ragged trailing block
        ((2, 4, 100, 128), jnp.float32, 320),    # 3 blocks, ragged trailing block
        ((3, 5, 17, 13), jnp.bfloat16, None),    # ragged element count -> jnp tail + bf16
    ]
    for shape, dtype, max_rows in cases:
        key, k1, k2 = jax.random.split(key, 3)
        prediction = jax.random.normal(k1, shape, dtype=jnp.float32).astype(dtype)
        target = jax.random.normal(k2, shape, dtype=jnp.float32).astype(dtype)

        if max_rows is None:
            loss = loss_fn(prediction, target)
        else:
            loss = weighted_mse_loss(prediction, target, loss_fn.dice_weight,
                                     max_tile_rows=max_rows)
        jax.block_until_ready(loss)

        ref = ref_loss(prediction, target)
        assert jnp.allclose(loss, ref, rtol=1e-4, atol=1e-6), (shape, dtype, loss, ref)

    print("KERNEL_OK")
</pallas_src>

<mosaic_0001>
module attributes {stable_mosaic.version = 11 : i64} {
  func.func @kernel(%arg0: i32, %arg1: memref<16x128xf32, #tpu.memory_space<vmem>>, %arg2: memref<16x128xf32, #tpu.memory_space<vmem>>, %arg3: memref<1x1xf32, #tpu.memory_space<smem>>) attributes {dimension_semantics = [#tpu.dimension_semantics<parallel>], iteration_bounds = array<i64: 1>, scalar_prefetch = 0 : i64, scratch_operands = 0 : i64, tpu.core_type = #tpu.core_type<tc>, window_params = [{transform_indices = @transform_0, window_bounds = array<i64: 16, 128>}, {transform_indices = @transform_1, window_bounds = array<i64: 16, 128>}, {transform_indices = @transform_2, window_bounds = array<i64: 1, 1>}]} {
    %c0 = arith.constant 0 : index
    %c0_0 = arith.constant 0 : index
    %0 = vector.load %arg1[%c0, %c0_0] : memref<16x128xf32, #tpu.memory_space<vmem>>, vector<16x128xf32>
    %c0_1 = arith.constant 0 : index
    %c0_2 = arith.constant 0 : index
    %1 = vector.load %arg2[%c0_1, %c0_2] : memref<16x128xf32, #tpu.memory_space<vmem>>, vector<16x128xf32>
    %2 = arith.subf %0, %1 : vector<16x128xf32>
    %3 = arith.mulf %2, %2 : vector<16x128xf32>
    %4 = vector.shape_cast %3 : vector<16x128xf32> to vector<1x16x128xf32>
    %cst = arith.constant dense<0.000000e+00> : vector<1xf32>
    %5 = vector.multi_reduction <add>, %4, %cst [1, 2] : vector<1x16x128xf32> to vector<1xf32>
    %6 = vector.shape_cast %5 : vector<1xf32> to vector<1x1x1xf32>
    %7 = vector.extract %6[0, 0, 0] : f32 from vector<1x1x1xf32>
    %cst_3 = arith.constant 0.000000e+00 : f32
    %8 = arith.addf %cst_3, %7 : f32
    %c0_4 = arith.constant 0 : index
    %c0_5 = arith.constant 0 : index
    %9 = memref.load %arg3[%c0_4, %c0_5] : memref<1x1xf32, #tpu.memory_space<smem>>
    memref.store %8, %arg3[%c0_4, %c0_5] : memref<1x1xf32, #tpu.memory_space<smem>>
    return
  }
  func.func @transform_0(%arg0: i32) -> (i32, i32) {
    %c0_i32 = arith.constant 0 : i32
    %c0_i32_0 = arith.constant 0 : i32
    return %arg0, %c0_i32 : i32, i32
  }
  func.func @transform_1(%arg0: i32) -> (i32, i32) {
    %c0_i32 = arith.constant 0 : i32
    %c0_i32_0 = arith.constant 0 : i32
    return %arg0, %c0_i32 : i32, i32
  }
  func.func @transform_2(%arg0: i32) -> (i32, i32) {
    %c0_i32 = arith.constant 0 : i32
    %c0_i32_0 = arith.constant 0 : i32
    return %arg0, %c0_i32 : i32, i32
  }
}

</mosaic_0001>

<bundles_post_ra>
// kernel: tpu_custom_call.1
= control target key start
LH: loop header
LB: loop body
LE: loop exit
PB: predicated region body
PF: predicated region fallthrough
CT: control target
= control target key end

     0   :  { %7 = vsyncpa [#allocation3], 0  ;;  %s166_s0 = inlined_call_operand.hbm [shape: f32[16,128], index: 0, kind: input, shape index: {}]   ;;  %s167_s1 = inlined_call_operand.hbm [shape: f32[16,128], index: 1, kind: input, shape index: {}]   ;;  %s168_s2 = inlined_call_operand.hbm [shape: f32[1,1], index: 2, kind: output, shape index: {}]  }
   0x1   :  { %8 = vsyncpa [#allocation6], 0 }
   0x2   :  { %9 = vsyncpa [#allocation4], 0  ;;  %s137_s9 = smov [#allocation2]  }
   0x3   :  { %s15_s10 = sshll.u32 %s137_s9, 4  ;;  %s16_s10 = int_to_ptr.vmem [resolvable:$true] %s15_s10 }
   0x4   :  { %s91_s11 = scalar_lea.vmem %s16_s10, 256  ;;  %p96_p1 = scmp.lt.s32.totalorder %s16_s10, %s16_s10 }
   0x5   :  { %p92_p0 = scmp.ne.s32.totalorder %s16_s10, %s91_s11  ;;  %p97_p2 = scmp.lt.s32.totalorder %s91_s11, %s91_s11 }
   0x7   :  { %p98_p3 = por %p97_p2, %p96_p1 }
   0x9   :  { %p99_p4 = pnand %p98_p3, %p92_p0 }
   0xb   :  { %102 = shalt.err (!%p99_p4)
}
   0xc   :  { %s138_s12 = smov 128   ;;  %s139_s13 = smov 8  }
   0xd   :  { %21 = dma.hbm_to_vmem [thread:$0]  %s166_s0, 256, %s16_s10, [#allocation3], %s138_s12, %s138_s12, %s139_s13  }
   0xe   :  { %s140_s16 = smov [#allocation5]  }
   0xf   :  { %s27_s17 = sshll.u32 %s140_s16, 4  ;;  %s28_s17 = int_to_ptr.vmem [resolvable:$true] %s27_s17 }
  0x10   :  { %s111_s18 = scalar_lea.vmem %s28_s17, 256  ;;  %p116_p6 = scmp.lt.s32.totalorder %s28_s17, %s28_s17 }
  0x11   :  { %p112_p5 = scmp.ne.s32.totalorder %s28_s17, %s111_s18  ;;  %p117_p7 = scmp.lt.s32.totalorder %s111_s18, %s111_s18 }
  0x13   :  { %p118_p8 = por %p117_p7, %p116_p6 }
  0x15   :  { %p119_p9 = pnand %p118_p8, %p112_p5 }
  0x17   :  { %122 = shalt.err (!%p119_p9)
}
  0x18   :  { %33 = dma.hbm_to_vmem [thread:$0]  %s167_s1, 256, %s28_s17, [#allocation6], %s138_s12, %s138_s12, %s139_s13  }
  0x19   :  { %131 = dma.done.wait [#allocation3], 256  }
  0x1a   :  { %132 = vsyncadd [#allocation3], 4294967040 }
  0x1b   :  { %133 = dma.done.wait [#allocation6], 256  }
  0x1c   :  { %134 = vsyncadd [#allocation6], 4294967040  ;;  %v40_v0 = vld [vmem:[#allocation2] sm:$0xff]  ;;  %v41_v1 = vld [vmem:[#allocation2 + $0x8] sm:$0xff]  ;;  %s141_s1 = smov [#allocation7]  }
  0x1d   :  { %v42_v2 = vld [vmem:[#allocation5] sm:$0xff]  ;;  %v43_v3 = vld [vmem:[#allocation5 + $0x8] sm:$0xff] }
  0x1e   :  { %v44_v4 = vsub.f32 %v40_v0, %v42_v2  ;;  %v45_v5 = vsub.f32 %v41_v1, %v43_v3 }
  0x20   :  { %v46_v6 = vmul.f32 %v44_v4, %v44_v4  ;;  %v47_v7 = vmul.f32 %v45_v5, %v45_v5 }
  0x22   :  { %v48_v8 = vadd.f32 %v47_v7, %v46_v6 }
  0x24   :  { %49 = vadd.xlane.f32.xlu0 %v48_v8 }
  0xad   :  { %v50_v9 = vpop.xlane.xlu0 %49 }
  0xae   :  { %v51_v10 = vrot.slane %v50_v9, 4 }
  0xb0   :  { %v52_v11 = vadd.f32 %v51_v10, %v50_v9 }
  0xb2   :  { %v53_v12 = vrot.slane %v52_v11, 2 }
  0xb4   :  { %v54_v13 = vadd.f32 %v53_v12, %v52_v11 }
  0xb6   :  { %v55_v14 = vrot.slane %v54_v13, 1 }
  0xb8   :  { %v56_v15 = vadd.f32 %v55_v14, %v54_v13 }
  0xba   :  { %76 = vpush %v56_v15 }
  0xeb   :  { %s77_s0 = spop %76 }
  0xec   :  { %60 = sst [smem:[#allocation7]] %s77_s0 }
  0xed   :  { %68 = dma.smem_to_hbm %s141_s1, 16, %s168_s2, [#allocation4]  }
  0xee   :  { %135 = dma.done.wait [#allocation4], 16  }
  0xef   :  { %136 = vsyncadd [#allocation4], 4294967280 }
  0xf0   :  { %72 = sfence }
  0xf1   :  { %73 = vsyncpa [#allocation3], 1 }
  0xf2   :  { %74 = vsyncpa [#allocation6], 1 }
  0xf3   :  { %75 = vsyncpa [#allocation4], 1 }

</bundles_post_ra>
